<compile_context>
chip_gen: v5e
topology: v5e:2x2
jax: 0.10.0
libtpu: 0.0.40
codegen_flags: <defaults>
</compile_context>

<pallas_src>
import functools

import jax
import jax.numpy as jnp
from jax.experimental import pallas as pl
from jax.experimental.pallas import tpu as pltpu


def _round_up(x, m):
    return ((x + m - 1) // m) * m


def _choose_tile_b(B):
    """Largest batch tile (multiple of 8) dividing B; else one full-array block."""
    for t in (512, 256, 128, 64, 32, 16, 8):
        if B % t == 0:
            return t
    return B


# ----------------------------------------------------------------------------
# Fused kernel: all LSTM layers in one body, one batch tile per grid step
# ----------------------------------------------------------------------------
def _fused_mlr_kernel(n_layers, Hp, x_ref, *refs):
    """refs layout: [W0, b0, c0_0, W1, b1, c0_1, ..., out_ref]

    W_k  : (Din_k, 4*Hp) bf16, pre-transposed, gate order (i, f, o, g); each gate
           zero-padded from H to Hp lanes, and (for k > 0) input rows zero-padded
           from H to Hp so the previous layer's padded hidden contributes 0.
    b_k  : (1, 4*Hp) f32 = b_ih + b_hh + h0_k @ W_hh_k^T (recurrent matmul folded),
           same gate reorder / padding (padded lanes are 0).
    c0_k : (1, Hp) f32 zero-padded initial cell state; broadcast over the batch.
    """
    out_ref = refs[-1]
    layer_refs = refs[:-1]

    inp = x_ref[...].astype(jnp.float32)            # (TB, Din0)
    for k in range(n_layers):                       # unrolled at trace time
        w = layer_refs[3 * k][...]                  # (Din_k, 4Hp) bf16
        b = layer_refs[3 * k + 1][...]              # (1, 4Hp)    f32
        c0 = layer_refs[3 * k + 2][...]             # (1, Hp)     f32

        # bf16 x bf16 MXU matmul, f32 accumulation; recurrent term folded into b.
        gates = jnp.dot(inp.astype(jnp.bfloat16), w,
                        preferred_element_type=jnp.float32) + b       # (TB, 4Hp)

        # Hp % 128 == 0: every slice below is a whole number of 128-lane vregs.
        # Gate order (i, f, o, g): one contiguous sigmoid on 3*Hp, one tanh on Hp.
        sig = jax.nn.sigmoid(gates[:, : 3 * Hp])
        g_g = jnp.tanh(gates[:, 3 * Hp:])
        i_g = sig[:, 0 * Hp:1 * Hp]
        f_g = sig[:, 1 * Hp:2 * Hp]
        o_g = sig[:, 2 * Hp:3 * Hp]

        c_new = f_g * c0 + i_g * g_g                # c0 (1,Hp) broadcasts over batch
        inp = o_g * jnp.tanh(c_new)                 # padded lanes stay exactly 0

    out_ref[...] = inp.astype(out_ref.dtype)        # lane-dense (TB, Hp) store


# ----------------------------------------------------------------------------
# Parameter init (torch-like) and one-time kernel weight preprocessing
# ----------------------------------------------------------------------------
def init_params(key, n_in, n_layers, n_units):
    """Mirrors torch.nn.LSTMCell default init: U(-k, k), k = 1/sqrt(H)."""
    params = []
    k = 1.0 / jnp.sqrt(jnp.float32(n_units))
    d_in = n_in
    for _ in range(n_layers):
        key, k1, k2, k3, k4 = jax.random.split(key, 5)
        layer = dict(
            w_ih=jax.random.uniform(k1, (4 * n_units, d_in), jnp.float32, -k, k),
            w_hh=jax.random.uniform(k2, (4 * n_units, n_units), jnp.float32, -k, k),
            b_ih=jax.random.uniform(k3, (4 * n_units,), jnp.float32, -k, k),
            b_hh=jax.random.uniform(k4, (4 * n_units,), jnp.float32, -k, k),
            # Recurrent.initial_hidden / initial_cell parameters (zeros)
            h0=jnp.zeros((1, n_units), jnp.float32),
            c0=jnp.zeros((1, n_units), jnp.float32),
        )
        params.append(layer)
        d_in = n_units
    return params


def prepare_kernel_params(params):
    """One-time prep: transpose, fold h0 @ W_hh^T into bias, reorder gates to
    (i, f, o, g), zero-pad each gate to a 128-lane block, cast weights to bf16."""
    prepped = []
    for idx, layer in enumerate(params):
        H = layer["h0"].shape[1]
        Hp = _round_up(H, 128)

        w_t = layer["w_ih"].T.astype(jnp.float32)                       # (Din, 4H)
        # h is batch-invariant at the fresh-state first step => fold into bias.
        b_eff = (layer["b_ih"] + layer["b_hh"])[None, :] + layer["h0"] @ layer["w_hh"].T

        def reorder(m):  # (i, f, g, o) -> (i, f, o, g) along the gate axis
            return jnp.concatenate(
                [m[..., : 2 * H], m[..., 3 * H: 4 * H], m[..., 2 * H: 3 * H]], axis=-1)

        def pad_gates(m):  # (..., 4H) -> (..., 4Hp): each gate zero-padded to Hp
            pad = [(0, 0)] * (m.ndim - 1) + [(0, Hp - H)]
            parts = [jnp.pad(m[..., g * H:(g + 1) * H], pad) for g in range(4)]
            return jnp.concatenate(parts, axis=-1)

        w_p = pad_gates(reorder(w_t))                                   # (Din, 4Hp)
        b_p = pad_gates(reorder(b_eff.astype(jnp.float32)))             # (1, 4Hp)
        if idx > 0:
            # Layers k>0 consume the previous layer's Hp-wide (zero-padded) hidden:
            # zero-pad the input rows so padded lanes contribute exactly 0.
            w_p = jnp.pad(w_p, ((0, Hp - H), (0, 0)))                   # (Hp, 4Hp)
        c0_p = jnp.pad(layer["c0"].astype(jnp.float32), ((0, 0), (0, Hp - H)))

        prepped.append(dict(
            w=w_p.astype(jnp.bfloat16),     # bf16 weights: half the HBM/VMEM bytes
            b=b_p,
            c0=c0_p,
        ))
    return prepped


# ----------------------------------------------------------------------------
# Forward: single fused pallas_call with a parallel batch grid, jitted
# ----------------------------------------------------------------------------
@functools.partial(jax.jit, static_argnames=("n_units",))
def multi_layer_recurrent_forward(kparams, x, *, n_units):
    B, Din0 = x.shape
    n_layers = len(kparams)
    Hp = kparams[0]["c0"].shape[1]

    flat = []
    for lp in kparams:
        flat.extend([lp["w"], lp["b"], lp["c0"]])
    args = (x,) + tuple(flat)

    TB = _choose_tile_b(B)
    grid = (B // TB,)

    in_specs = [pl.BlockSpec((TB, Din0), lambda i: (i, 0))]
    # Weights / biases / c0: same block for every batch tile -> stay VMEM-resident.
    for a in flat:
        in_specs.append(pl.BlockSpec(a.shape, lambda i, nd=a.ndim: (0,) * nd))
    out_spec = pl.BlockSpec((TB, Hp), lambda i: (i, 0))

    # Raise the scoped-VMEM default (16 MiB v5e / 32 MiB v6e, v7x) when the
    # resident weights need it; capped conservatively for v7x's 64 MiB VMEM.
    # (At production sizes on v5e/v6e this can be raised toward 128 MiB.)
    arg_bytes = sum(a.size * a.dtype.itemsize for a in args) + B * Hp * 4
    vmem_limit = int(min(64 * 1024 * 1024, max(32 * 1024 * 1024, 3 * arg_bytes)))

    kernel = functools.partial(_fused_mlr_kernel, n_layers, Hp)
    out_padded = pl.pallas_call(
        kernel,
        out_shape=jax.ShapeDtypeStruct((B, Hp), jnp.float32),
        grid=grid,
        in_specs=in_specs,
        out_specs=out_spec,
        compiler_params=pltpu.CompilerParams(
            dimension_semantics=("parallel",),
            vmem_limit_bytes=vmem_limit),
    )(*args)
    return out_padded[:, :n_units]          # drop lane padding (no-op if H % 128 == 0)


# ----------------------------------------------------------------------------
# Pure-JAX f32 reference (uses the raw, untouched params)
# ----------------------------------------------------------------------------
def _ref_forward(params, x):
    B = x.shape[0]
    inp = x
    for layer in params:
        H = layer["h0"].shape[1]
        h = jnp.broadcast_to(layer["h0"], (B, H))
        c = jnp.broadcast_to(layer["c0"], (B, H))
        gates = inp @ layer["w_ih"].T + h @ layer["w_hh"].T + layer["b_ih"] + layer["b_hh"]
        i_g = jax.nn.sigmoid(gates[:, 0 * H:1 * H])
        f_g = jax.nn.sigmoid(gates[:, 1 * H:2 * H])
        g_g = jnp.tanh(gates[:, 2 * H:3 * H])
        o_g = jax.nn.sigmoid(gates[:, 3 * H:4 * H])
        c_new = f_g * c + i_g * g_g
        inp = o_g * jnp.tanh(c_new)
    return inp


if __name__ == "__main__":
    batch, n_in, n_layers, n_units = 8, 16, 3, 32

    key = jax.random.PRNGKey(0)
    key, pkey, xkey = jax.random.split(key, 3)
    params = init_params(pkey, n_in, n_layers, n_units)
    kparams = prepare_kernel_params(params)          # one-time weight prep
    x = jax.random.normal(xkey, (batch, n_in), jnp.float32)

    out = multi_layer_recurrent_forward(kparams, x, n_units=n_units)
    out = jax.block_until_ready(out)

    ref = _ref_forward(params, x)
    assert out.shape == (batch, n_units)
    # bf16 weights / matmul operand (f32 accumulation) => relaxed tolerance vs f32 ref.
    assert jnp.allclose(out, ref, atol=2e-2, rtol=2e-2), float(jnp.max(jnp.abs(out - ref)))

    print("KERNEL_OK")
</pallas_src>

<mosaic_0001>
module attributes {stable_mosaic.version = 11 : i64} {
  func.func @_fused_mlr_kernel(%arg0: i32, %arg1: memref<8x16xf32, #tpu.memory_space<vmem>>, %arg2: memref<16x512xbf16, #tpu.memory_space<vmem>>, %arg3: memref<1x512xf32, #tpu.memory_space<vmem>>, %arg4: memref<1x128xf32, #tpu.memory_space<vmem>>, %arg5: memref<128x512xbf16, #tpu.memory_space<vmem>>, %arg6: memref<1x512xf32, #tpu.memory_space<vmem>>, %arg7: memref<1x128xf32, #tpu.memory_space<vmem>>, %arg8: memref<128x512xbf16, #tpu.memory_space<vmem>>, %arg9: memref<1x512xf32, #tpu.memory_space<vmem>>, %arg10: memref<1x128xf32, #tpu.memory_space<vmem>>, %arg11: memref<8x128xf32, #tpu.memory_space<vmem>>) attributes {dimension_semantics = [#tpu.dimension_semantics<parallel>], iteration_bounds = array<i64: 1>, scalar_prefetch = 0 : i64, scratch_operands = 0 : i64, tpu.core_type = #tpu.core_type<tc>, window_params = [{transform_indices = @transform_0, window_bounds = array<i64: 8, 16>}, {pipeline_mode = #tpu.pipeline_mode<synchronous>, transform_indices = @transform_1, window_bounds = array<i64: 16, 512>}, {pipeline_mode = #tpu.pipeline_mode<synchronous>, transform_indices = @transform_2, window_bounds = array<i64: 1, 512>}, {pipeline_mode = #tpu.pipeline_mode<synchronous>, transform_indices = @transform_3, window_bounds = array<i64: 1, 128>}, {pipeline_mode = #tpu.pipeline_mode<synchronous>, transform_indices = @transform_4, window_bounds = array<i64: 128, 512>}, {pipeline_mode = #tpu.pipeline_mode<synchronous>, transform_indices = @transform_5, window_bounds = array<i64: 1, 512>}, {pipeline_mode = #tpu.pipeline_mode<synchronous>, transform_indices = @transform_6, window_bounds = array<i64: 1, 128>}, {pipeline_mode = #tpu.pipeline_mode<synchronous>, transform_indices = @transform_7, window_bounds = array<i64: 128, 512>}, {pipeline_mode = #tpu.pipeline_mode<synchronous>, transform_indices = @transform_8, window_bounds = array<i64: 1, 512>}, {pipeline_mode = #tpu.pipeline_mode<synchronous>, transform_indices = @transform_9, window_bounds = array<i64: 1, 128>}, {transform_indices = @transform_10, window_bounds = array<i64: 8, 128>}]} {
    %c0 = arith.constant 0 : index
    %c0_0 = arith.constant 0 : index
    %0 = vector.load %arg1[%c0, %c0_0] : memref<8x16xf32, #tpu.memory_space<vmem>>, vector<8x16xf32>
    %c0_1 = arith.constant 0 : index
    %c0_2 = arith.constant 0 : index
    %1 = vector.load %arg2[%c0_1, %c0_2] : memref<16x512xbf16, #tpu.memory_space<vmem>>, vector<16x512xbf16>
    %c0_3 = arith.constant 0 : index
    %c0_4 = arith.constant 0 : index
    %2 = vector.load %arg3[%c0_3, %c0_4] : memref<1x512xf32, #tpu.memory_space<vmem>>, vector<1x512xf32>
    %c0_5 = arith.constant 0 : index
    %c0_6 = arith.constant 0 : index
    %3 = vector.load %arg4[%c0_5, %c0_6] : memref<1x128xf32, #tpu.memory_space<vmem>>, vector<1x128xf32>
    %4 = arith.truncf %0 : vector<8x16xf32> to vector<8x16xbf16>
    %cst = arith.constant dense<0.000000e+00> : vector<8x512xf32>
    %5 = tpu.matmul %4, %1, %cst {dimension_numbers = #tpu.dot_dimension_numbers<[1], [0], [0], [1], [0, 0, 1, 1], [], []>} : vector<8x16xbf16>, vector<16x512xbf16>, vector<8x512xf32> -> vector<8x512xf32>
    %6 = vector.broadcast %2 : vector<1x512xf32> to vector<8x512xf32>
    %7 = arith.addf %5, %6 : vector<8x512xf32>
    %8 = vector.extract_strided_slice %7 {offsets = [0, 0], sizes = [8, 384], strides = [1, 1]} : vector<8x512xf32> to vector<8x384xf32>
    %9 = arith.negf %8 : vector<8x384xf32>
    %10 = math.exp %9 : vector<8x384xf32>
    %cst_7 = arith.constant 1.000000e+00 : f32
    %11 = vector.broadcast %cst_7 : f32 to vector<8x384xf32>
    %12 = arith.addf %11, %10 : vector<8x384xf32>
    %13 = arith.divf %11, %12 : vector<8x384xf32>
    %14 = vector.extract_strided_slice %7 {offsets = [0, 384], sizes = [8, 128], strides = [1, 1]} : vector<8x512xf32> to vector<8x128xf32>
    %15 = math.tanh %14 : vector<8x128xf32>
    %16 = vector.extract_strided_slice %13 {offsets = [0, 0], sizes = [8, 128], strides = [1, 1]} : vector<8x384xf32> to vector<8x128xf32>
    %17 = vector.extract_strided_slice %13 {offsets = [0, 128], sizes = [8, 128], strides = [1, 1]} : vector<8x384xf32> to vector<8x128xf32>
    %18 = vector.extract_strided_slice %13 {offsets = [0, 256], sizes = [8, 128], strides = [1, 1]} : vector<8x384xf32> to vector<8x128xf32>
    %19 = vector.broadcast %3 : vector<1x128xf32> to vector<8x128xf32>
    %20 = arith.mulf %17, %19 : vector<8x128xf32>
    %21 = arith.mulf %16, %15 : vector<8x128xf32>
    %22 = arith.addf %20, %21 : vector<8x128xf32>
    %23 = math.tanh %22 : vector<8x128xf32>
    %24 = arith.mulf %18, %23 : vector<8x128xf32>
    %c0_8 = arith.constant 0 : index
    %c0_9 = arith.constant 0 : index
    %25 = vector.load %arg5[%c0_8, %c0_9] : memref<128x512xbf16, #tpu.memory_space<vmem>>, vector<128x512xbf16>
    %c0_10 = arith.constant 0 : index
    %c0_11 = arith.constant 0 : index
    %26 = vector.load %arg6[%c0_10, %c0_11] : memref<1x512xf32, #tpu.memory_space<vmem>>, vector<1x512xf32>
    %c0_12 = arith.constant 0 : index
    %c0_13 = arith.constant 0 : index
    %27 = vector.load %arg7[%c0_12, %c0_13] : memref<1x128xf32, #tpu.memory_space<vmem>>, vector<1x128xf32>
    %28 = arith.truncf %24 : vector<8x128xf32> to vector<8x128xbf16>
    %cst_14 = arith.constant dense<0.000000e+00> : vector<8x512xf32>
    %29 = tpu.matmul %28, %25, %cst_14 {dimension_numbers = #tpu.dot_dimension_numbers<[1], [0], [0], [1], [0, 0, 1, 1], [], []>} : vector<8x128xbf16>, vector<128x512xbf16>, vector<8x512xf32> -> vector<8x512xf32>
    %30 = vector.broadcast %26 : vector<1x512xf32> to vector<8x512xf32>
    %31 = arith.addf %29, %30 : vector<8x512xf32>
    %32 = vector.extract_strided_slice %31 {offsets = [0, 0], sizes = [8, 384], strides = [1, 1]} : vector<8x512xf32> to vector<8x384xf32>
    %33 = arith.negf %32 : vector<8x384xf32>
    %34 = math.exp %33 : vector<8x384xf32>
    %cst_15 = arith.constant 1.000000e+00 : f32
    %35 = vector.broadcast %cst_15 : f32 to vector<8x384xf32>
    %36 = arith.addf %35, %34 : vector<8x384xf32>
    %37 = arith.divf %35, %36 : vector<8x384xf32>
    %38 = vector.extract_strided_slice %31 {offsets = [0, 384], sizes = [8, 128], strides = [1, 1]} : vector<8x512xf32> to vector<8x128xf32>
    %39 = math.tanh %38 : vector<8x128xf32>
    %40 = vector.extract_strided_slice %37 {offsets = [0, 0], sizes = [8, 128], strides = [1, 1]} : vector<8x384xf32> to vector<8x128xf32>
    %41 = vector.extract_strided_slice %37 {offsets = [0, 128], sizes = [8, 128], strides = [1, 1]} : vector<8x384xf32> to vector<8x128xf32>
    %42 = vector.extract_strided_slice %37 {offsets = [0, 256], sizes = [8, 128], strides = [1, 1]} : vector<8x384xf32> to vector<8x128xf32>
    %43 = vector.broadcast %27 : vector<1x128xf32> to vector<8x128xf32>
    %44 = arith.mulf %41, %43 : vector<8x128xf32>
    %45 = arith.mulf %40, %39 : vector<8x128xf32>
    %46 = arith.addf %44, %45 : vector<8x128xf32>
    %47 = math.tanh %46 : vector<8x128xf32>
    %48 = arith.mulf %42, %47 : vector<8x128xf32>
    %c0_16 = arith.constant 0 : index
    %c0_17 = arith.constant 0 : index
    %49 = vector.load %arg8[%c0_16, %c0_17] : memref<128x512xbf16, #tpu.memory_space<vmem>>, vector<128x512xbf16>
    %c0_18 = arith.constant 0 : index
    %c0_19 = arith.constant 0 : index
    %50 = vector.load %arg9[%c0_18, %c0_19] : memref<1x512xf32, #tpu.memory_space<vmem>>, vector<1x512xf32>
    %c0_20 = arith.constant 0 : index
    %c0_21 = arith.constant 0 : index
    %51 = vector.load %arg10[%c0_20, %c0_21] : memref<1x128xf32, #tpu.memory_space<vmem>>, vector<1x128xf32>
    %52 = arith.truncf %48 : vector<8x128xf32> to vector<8x128xbf16>
    %cst_22 = arith.constant dense<0.000000e+00> : vector<8x512xf32>
    %53 = tpu.matmul %52, %49, %cst_22 {dimension_numbers = #tpu.dot_dimension_numbers<[1], [0], [0], [1], [0, 0, 1, 1], [], []>} : vector<8x128xbf16>, vector<128x512xbf16>, vector<8x512xf32> -> vector<8x512xf32>
    %54 = vector.broadcast %50 : vector<1x512xf32> to vector<8x512xf32>
    %55 = arith.addf %53, %54 : vector<8x512xf32>
    %56 = vector.extract_strided_slice %55 {offsets = [0, 0], sizes = [8, 384], strides = [1, 1]} : vector<8x512xf32> to vector<8x384xf32>
    %57 = arith.negf %56 : vector<8x384xf32>
    %58 = math.exp %57 : vector<8x384xf32>
    %cst_23 = arith.constant 1.000000e+00 : f32
    %59 = vector.broadcast %cst_23 : f32 to vector<8x384xf32>
    %60 = arith.addf %59, %58 : vector<8x384xf32>
    %61 = arith.divf %59, %60 : vector<8x384xf32>
    %62 = vector.extract_strided_slice %55 {offsets = [0, 384], sizes = [8, 128], strides = [1, 1]} : vector<8x512xf32> to vector<8x128xf32>
    %63 = math.tanh %62 : vector<8x128xf32>
    %64 = vector.extract_strided_slice %61 {offsets = [0, 0], sizes = [8, 128], strides = [1, 1]} : vector<8x384xf32> to vector<8x128xf32>
    %65 = vector.extract_strided_slice %61 {offsets = [0, 128], sizes = [8, 128], strides = [1, 1]} : vector<8x384xf32> to vector<8x128xf32>
    %66 = vector.extract_strided_slice %61 {offsets = [0, 256], sizes = [8, 128], strides = [1, 1]} : vector<8x384xf32> to vector<8x128xf32>
    %67 = vector.broadcast %51 : vector<1x128xf32> to vector<8x128xf32>
    %68 = arith.mulf %65, %67 : vector<8x128xf32>
    %69 = arith.mulf %64, %63 : vector<8x128xf32>
    %70 = arith.addf %68, %69 : vector<8x128xf32>
    %71 = math.tanh %70 : vector<8x128xf32>
    %72 = arith.mulf %66, %71 : vector<8x128xf32>
    %c0_24 = arith.constant 0 : index
    %c0_25 = arith.constant 0 : index
    %73 = vector.load %arg11[%c0_24, %c0_25] : memref<8x128xf32, #tpu.memory_space<vmem>>, vector<8x128xf32>
    tpu.vector_store %arg11[%c0_24, %c0_25], %72 {strides = array<i32>} : memref<8x128xf32, #tpu.memory_space<vmem>>, vector<8x128xf32>,
    return
  }
  func.func @transform_0(%arg0: i32) -> (i32, i32) {
    %c0_i32 = arith.constant 0 : i32
    %c0_i32_0 = arith.constant 0 : i32
    return %arg0, %c0_i32 : i32, i32
  }
  func.func @transform_1(%arg0: i32) -> (i32, i32) {
    %c0_i32 = arith.constant 0 : i32
    %c0_i32_0 = arith.constant 0 : i32
    %c0_i32_1 = arith.constant 0 : i32
    return %c0_i32, %c0_i32_0 : i32, i32
  }
  func.func @transform_2(%arg0: i32) -> (i32, i32) {
    %c0_i32 = arith.constant 0 : i32
    %c0_i32_0 = arith.constant 0 : i32
    %c0_i32_1 = arith.constant 0 : i32
    return %c0_i32, %c0_i32_0 : i32, i32
  }
  func.func @transform_3(%arg0: i32) -> (i32, i32) {
    %c0_i32 = arith.constant 0 : i32
    %c0_i32_0 = arith.constant 0 : i32
    %c0_i32_1 = arith.constant 0 : i32
    return %c0_i32, %c0_i32_0 : i32, i32
  }
  func.func @transform_4(%arg0: i32) -> (i32, i32) {
    %c0_i32 = arith.constant 0 : i32
    %c0_i32_0 = arith.constant 0 : i32
    %c0_i32_1 = arith.constant 0 : i32
    return %c0_i32, %c0_i32_0 : i32, i32
  }
  func.func @transform_5(%arg0: i32) -> (i32, i32) {
    %c0_i32 = arith.constant 0 : i32
    %c0_i32_0 = arith.constant 0 : i32
    %c0_i32_1 = arith.constant 0 : i32
    return %c0_i32, %c0_i32_0 : i32, i32
  }
  func.func @transform_6(%arg0: i32) -> (i32, i32) {
    %c0_i32 = arith.constant 0 : i32
    %c0_i32_0 = arith.constant 0 : i32
    %c0_i32_1 = arith.constant 0 : i32
    return %c0_i32, %c0_i32_0 : i32, i32
  }
  func.func @transform_7(%arg0: i32) -> (i32, i32) {
    %c0_i32 = arith.constant 0 : i32
    %c0_i32_0 = arith.constant 0 : i32
    %c0_i32_1 = arith.constant 0 : i32
    return %c0_i32, %c0_i32_0 : i32, i32
  }
  func.func @transform_8(%arg0: i32) -> (i32, i32) {
    %c0_i32 = arith.constant 0 : i32
    %c0_i32_0 = arith.constant 0 : i32
    %c0_i32_1 = arith.constant 0 : i32
    return %c0_i32, %c0_i32_0 : i32, i32
  }
  func.func @transform_9(%arg0: i32) -> (i32, i32) {
    %c0_i32 = arith.constant 0 : i32
    %c0_i32_0 = arith.constant 0 : i32
    %c0_i32_1 = arith.constant 0 : i32
    return %c0_i32, %c0_i32_0 : i32, i32
  }
  func.func @transform_10(%arg0: i32) -> (i32, i32) {
    %c0_i32 = arith.constant 0 : i32
    %c0_i32_0 = arith.constant 0 : i32
    return %arg0, %c0_i32 : i32, i32
  }
}

</mosaic_0001>

<bundles_post_ra>
// kernel: multi_layer_recurrent_forward.1
= control target key start
LH: loop header
LB: loop body
LE: loop exit
PB: predicated region body
PF: predicated region fallthrough
CT: control target
= control target key end

     0   :  { %15 = vsyncpa [#allocation3], 0  ;;  %s1779_s0 = inlined_call_operand.vmem [shape: f32[8,16], index: 0, kind: input, shape index: {}]   ;;  %s1780_s1 = inlined_call_operand.hbm [shape: bf16[16,512], index: 1, kind: input, shape index: {}]   ;;  %s1781_s2 = inlined_call_operand.hbm [shape: f32[1,512], index: 2, kind: input, shape index: {}]   ;;  %s1782_s3 = inlined_call_operand.hbm [shape: f32[1,128], index: 3, kind: input, shape index: {}]   ;;  %s1783_s4 = inlined_call_operand.hbm [shape: bf16[128,512], index: 4, kind: input, shape index: {}]   ;;  %s1784_s5 = inlined_call_operand.hbm [shape: f32[1,512], index: 5, kind: input, shape index: {}]   ;;  %s1785_s6 = inlined_call_operand.hbm [shape: f32[1,128], index: 6, kind: input, shape index: {}]   ;;  %s1786_s7 = inlined_call_operand.hbm [shape: bf16[128,512], index: 7, kind: input, shape index: {}]   ;;  %s1787_s8 = inlined_call_operand.hbm [shape: f32[1,512], index: 8, kind: input, shape index: {}]   ;;  %s1788_s9 = inlined_call_operand.hbm [shape: f32[1,128], index: 9, kind: input, shape index: {}]   ;;  %s1789_s10 = inlined_call_operand.hbm [shape: f32[8,128], index: 10, kind: output, shape index: {}]  }
   0x1   :  { %16 = vsyncpa [#allocation6], 0 }
   0x2   :  { %17 = vsyncpa [#allocation9], 0 }
   0x3   :  { %18 = vsyncpa [#allocation12], 0 }
   0x4   :  { %19 = vsyncpa [#allocation15], 0  ;;  %s41_s15 = sshll.u32 %s1781_s2, 4  ;;  %s42_s15 = int_to_ptr.hbm [resolvable:$true] %s41_s15 }
   0x5   :  { %20 = vsyncpa [#allocation4], 0  ;;  %s1658_s16 = smov [#allocation5]   ;;  %s62_s20 = sshll.u32 %s1783_s4, 4  ;;  %s63_s20 = int_to_ptr.hbm [resolvable:$true] %s62_s20 }
   0x6   :  { %s43_s17 = sshll.u32 %s1658_s16, 4  ;;  %s1659_s21 = smov [#allocation8]   ;;  %s44_s17 = int_to_ptr.vmem [resolvable:$true] %s43_s17 }
   0x7   :  { %46 = dma.hbm_to_vmem [thread:$0]  %s42_s15, 64, %s44_s17, [#allocation6]  }
   0x8   :  { %s64_s22 = sshll.u32 %s1659_s21, 4  ;;  %s87_s25 = sshll.u32 %s1785_s6, 4  ;;  %s65_s22 = int_to_ptr.vmem [resolvable:$true] %s64_s22  ;;  %s88_s25 = int_to_ptr.hbm [resolvable:$true] %s87_s25 }
   0x9   :  { %s1660_s2 = smov 256   ;;  %s1661_s26 = smov 16  }
   0xa   :  { %70 = dma.hbm_to_vmem [thread:$0]  %s63_s20, 4096, %s65_s22, [#allocation9], %s1660_s2, %s1660_s2, %s1661_s26  }
   0xb   :  { %s111_s29 = sshll.u32 %s1787_s8, 4  ;;  %s1662_s4 = smov [#allocation11]   ;;  %s112_s29 = int_to_ptr.hbm [resolvable:$true] %s111_s29 }
   0xc   :  { %s89_s30 = sshll.u32 %s1662_s4, 4  ;;  %s1663_s11 = smov [#allocation14]   ;;  %s90_s30 = int_to_ptr.vmem [resolvable:$true] %s89_s30 }
   0xd   :  { %92 = dma.hbm_to_vmem [thread:$0]  %s88_s25, 16, %s90_s30, [#allocation12]  }
   0xe   :  { %s113_s12 = sshll.u32 %s1663_s11, 4  ;;  %s27_s14 = sshll.u32 %s1780_s1, 4  ;;  %s114_s12 = int_to_ptr.vmem [resolvable:$true] %s113_s12  ;;  %s28_s14 = int_to_ptr.hbm [resolvable:$true] %s27_s14 }
   0xf   :  { %116 = dma.hbm_to_vmem [thread:$0]  %s112_s29, 64, %s114_s12, [#allocation15]  }
  0x10   :  { %s52_s17 = sshll.u32 %s1782_s3, 4  ;;  %s1664_s18 = smov [#allocation2]   ;;  %s53_s17 = int_to_ptr.hbm [resolvable:$true] %s52_s17 }
  0x11   :  { %s29_s8 = sshll.u32 %s1664_s18, 4  ;;  %s1665_s19 = smov [#allocation7]   ;;  %s30_s8 = int_to_ptr.vmem [resolvable:$true] %s29_s8 }
  0x12   :  { %35 = dma.hbm_to_vmem [thread:$0]  %s28_s14, 512, %s30_s8, [#allocation3], %s1660_s2, %s1660_s2, %s1661_s26  }
  0x13   :  { %s54_s20 = sshll.u32 %s1665_s19, 4  ;;  %s76_s1 = sshll.u32 %s1784_s5, 4  ;;  %s55_s20 = int_to_ptr.vmem [resolvable:$true] %s54_s20  ;;  %s77_s1 = int_to_ptr.hbm [resolvable:$true] %s76_s1 }
  0x14   :  { %57 = dma.hbm_to_vmem [thread:$0]  %s53_s17, 16, %s55_s20, [#allocation6]  }
  0x15   :  { %s97_s3 = sshll.u32 %s1786_s7, 4  ;;  %s1666_s25 = smov [#allocation10]   ;;  %s98_s3 = int_to_ptr.hbm [resolvable:$true] %s97_s3 }
  0x16   :  { %s78_s27 = sshll.u32 %s1666_s25, 4  ;;  %s1667_s28 = smov [#allocation13]   ;;  %s79_s27 = int_to_ptr.vmem [resolvable:$true] %s78_s27 }
  0x17   :  { %81 = dma.hbm_to_vmem [thread:$0]  %s77_s1, 64, %s79_s27, [#allocation9]  }
  0x18   :  { %s99_s29 = sshll.u32 %s1667_s28, 4  ;;  %s122_s11 = sshll.u32 %s1788_s9, 4  ;;  %s100_s29 = int_to_ptr.vmem [resolvable:$true] %s99_s29  ;;  %s123_s11 = int_to_ptr.hbm [resolvable:$true] %s122_s11 }
  0x19   :  { %105 = dma.hbm_to_vmem [thread:$0]  %s98_s3, 4096, %s100_s29, [#allocation12], %s1660_s2, %s1660_s2, %s1661_s26  }
  0x1a   :  { %s1668_s5 = smov [#allocation16]  }
  0x1b   :  { %s124_s12 = sshll.u32 %s1668_s5, 4  ;;  %s125_s12 = int_to_ptr.vmem [resolvable:$true] %s124_s12 }
  0x1c   :  { %127 = dma.hbm_to_vmem [thread:$0]  %s123_s11, 16, %s125_s12, [#allocation15]  }
  0x1d   :  { %1646 = dma.done.wait [#allocation3], 512  }
  0x1e   :  { %1647 = vsyncadd [#allocation3], 4294966784 }
  0x1f   :  { %1648 = dma.done.wait [#allocation6], 80  }
  0x20   :  { %1649 = vsyncadd [#allocation6], 4294967216 }
  0x21   :  { %1650 = dma.done.wait [#allocation9], 4160  }
  0x22   :  { %1651 = vsyncadd [#allocation9], 4294963136 }
  0x23   :  { %1652 = dma.done.wait [#allocation12], 4112  }
  0x24   :  { %1653 = vsyncadd [#allocation12], 4294963184 }
  0x25   :  { %1654 = dma.done.wait [#allocation15], 80  }
  0x26   :  { %1655 = vsyncadd [#allocation15], 4294967216  ;;  %v992_v0 = vld [vmem:[#allocation2] sm:$0xf]  ;;  %v1277_v1 = vld [vmem:[#allocation2 + $0xc] sm:$0xf0] }
  0x27   :  { %v1275_v2 = vld [vmem:[#allocation2 + $0x4] sm:$0xf]  ;;  %v993_v3 = vor.u32 %v1277_v1, %v992_v0  ;;  %v994_v4 = vld [vmem:[#allocation2 + $0x10] sm:$0xf0]  ;;  %v1000_v5 = vld [vmem:[#allocation2 + $0x8] sm:$0xf] }
  0x28   :  { %v1278_v6 = vld [vmem:[#allocation2 + $0x14] sm:$0xf0]  ;;  %v997_v7 = vor.u32 %v1275_v2, %v994_v4  ;;  %v1276_v10 = vld [vmem:[#allocation2 + $0xc] sm:$0xf]  ;;  %v1002_v11 = vld [vmem:[#allocation2 + $0x18] sm:$0xf0] }
  0x29   :  { %v1001_v8 = vor.u32 %v1278_v6, %v1000_v5  ;;  %v165_v9 = vld [vmem:[%s1779_s0] sm:$0xff]  ;;  %213 = vmatpush.bf16.msra.mxu0 %v993_v3  ;;  %vm202_vm0 = vcmask 130048   ;;  %v1005_v13 = vor.u32 %v1276_v10, %v1002_v11  ;;  %v1127_v14 = vld [vmem:[#allocation8 + $0xe0] sm:$0xf]  ;;  %v1307_v16 = vld [vmem:[#allocation8 + $0xe4] sm:$0xf] }
  0x2a   :  { %v172_v12 = vpack.c.bf16 %v165_v9, %v165_v9  ;;  %226 = vmatpush.bf16.msra.mxu1 %v997_v7  ;;  %v1309_v15 = vld [vmem:[#allocation8 + $0xec] sm:$0xf0]  ;;  %v1129_v18 = vld [vmem:[#allocation8 + $0xf0] sm:$0xf0]  ;;  %v1135_v19 = vld [vmem:[#allocation8 + $0xe8] sm:$0xf] }
  0x2b   :  { %239 = vmatpush.bf16.msra.mxu2 %v1001_v8  ;;  %252 = vmatpush.bf16.msra.mxu3 %v1005_v13  ;;  %v1128_v17 = vor.u32 %v1309_v15, %v1127_v14  ;;  %v1310_v20 = vld [vmem:[#allocation8 + $0xf4] sm:$0xf0]  ;;  %v1132_v21 = vor.u32 %v1307_v16, %v1129_v18  ;;  %v1308_v23 = vld [vmem:[#allocation8 + $0xec] sm:$0xf]  ;;  %v1137_v24 = vld [vmem:[#allocation8 + $0xf8] sm:$0xf0] }
  0x2c   :  { %1006 = vmatmul.msk.bf16.vlgmr.msra.gmra.mxu0 %vm202_vm0, %v172_v12  ;;  %v1136_v22 = vor.u32 %v1310_v20, %v1135_v19  ;;  %v1140_v25 = vor.u32 %v1308_v23, %v1137_v24  ;;  %v1111_v26 = vld [vmem:[#allocation8 + $0xc0] sm:$0xf]  ;;  %v1305_v27 = vld [vmem:[#allocation8 + $0xcc] sm:$0xf0]  ;;  %v1303_v28 = vld [vmem:[#allocation8 + $0xc4] sm:$0xf] }
  0x2d   :  { %1007 = vmatmul.msk.bf16.vlgmr.msra.gmra.mxu1 %vm202_vm0, %v172_v12  ;;  %528 = vmatpush.bf16.msrb.mxu0 %v1128_v17  ;;  %v1112_v29 = vor.u32 %v1305_v27, %v1111_v26  ;;  %v1113_v30 = vld [vmem:[#allocation8 + $0xd0] sm:$0xf0]  ;;  %v1119_v31 = vld [vmem:[#allocation8 + $0xc8] sm:$0xf]  ;;  %v1306_v32 = vld [vmem:[#allocation8 + $0xd4] sm:$0xf0] }
  0x2e   :  { %1008 = vmatmul.msk.bf16.vlgmr.msra.gmra.mxu2 %vm202_vm0, %v172_v12  ;;  %1009 = vmatmul.msk.bf16.vlgmr.msra.gmra.mxu3 %vm202_vm0, %v172_v12  ;;  %v1116_v33 = vor.u32 %v1303_v28, %v1113_v30  ;;  %v1120_v34 = vor.u32 %v1306_v32, %v1119_v31  ;;  %v1304_v35 = vld [vmem:[#allocation8 + $0xcc] sm:$0xf]  ;;  %v1121_v36 = vld [vmem:[#allocation8 + $0xd8] sm:$0xf0]  ;;  %v1095_v38 = vld [vmem:[#allocation8 + $0xa0] sm:$0xf] }
  0x2f   :  { %541 = vmatpush.bf16.msrb.mxu1 %v1132_v21  ;;  %554 = vmatpush.bf16.msrb.mxu2 %v1136_v22  ;;  %v1124_v37 = vor.u32 %v1304_v35, %v1121_v36  ;;  %v1301_v39 = vld [vmem:[#allocation8 + $0xac] sm:$0xf0]  ;;  %v1299_v41 = vld [vmem:[#allocation8 + $0xa4] sm:$0xf]  ;;  %v1097_v42 = vld [vmem:[#allocation8 + $0xb0] sm:$0xf0] }
  0x30   :  { %567 = vmatpush.bf16.msrb.mxu3 %v1140_v25  ;;  %v1096_v40 = vor.u32 %v1301_v39, %v1095_v38  ;;  %v1103_v43 = vld [vmem:[#allocation8 + $0xa8] sm:$0xf]  ;;  %v1100_v44 = vor.u32 %v1299_v41, %v1097_v42  ;;  %v1302_v45 = vld [vmem:[#allocation8 + $0xb4] sm:$0xf0]  ;;  %v1300_v46 = vld [vmem:[#allocation8 + $0xac] sm:$0xf] }
  0x31   :  { %529 = vmatpush.bf16.msrb.mxu0 %v1112_v29  ;;  %v1105_v47 = vld [vmem:[#allocation8 + $0xb8] sm:$0xf0]  ;;  %v1104_v49 = vor.u32 %v1302_v45, %v1103_v43  ;;  %v1079_v51 = vld [vmem:[#allocation8 + $0x80] sm:$0xf]  ;;  %v1297_v52 = vld [vmem:[#allocation8 + $0x8c] sm:$0xf0] }
  0x32   :  { %v1764_v48 = vld [vmem:[#allocation5] sm:$0xf]  ;;  %v1108_v50 = vor.u32 %v1300_v46, %v1105_v47  ;;  %v1295_v53 = vld [vmem:[#allocation8 + $0x84] sm:$0xf]  ;;  %v1080_v54 = vor.u32 %v1297_v52, %v1079_v51  ;;  %v1081_v55 = vld [vmem:[#allocation8 + $0x90] sm:$0xf0] }
  0x33   :  { %542 = vmatpush.bf16.msrb.mxu1 %v1116_v33  ;;  %555 = vmatpush.bf16.msrb.mxu2 %v1120_v34  ;;  %v1087_v56 = vld [vmem:[#allocation8 + $0x88] sm:$0xf]  ;;  %v1298_v57 = vld [vmem:[#allocation8 + $0x94] sm:$0xf0]  ;;  %v1084_v58 = vor.u32 %v1295_v53, %v1081_v55  ;;  %v1296_v60 = vld [vmem:[#allocation8 + $0x8c] sm:$0xf] }
  0x34   :  { %568 = vmatpush.bf16.msrb.mxu3 %v1124_v37  ;;  %v1088_v59 = vor.u32 %v1298_v57, %v1087_v56  ;;  %v1089_v61 = vld [vmem:[#allocation8 + $0x98] sm:$0xf0]  ;;  %v174_v62 = vperm.slane %v1764_v48, 0  ;;  %v1063_v0 = vld [vmem:[#allocation8 + $0x60] sm:$0xf]  ;;  %v175_v3 = vperm.slane %v1764_v48, 1 }
  0x35   :  { %530 = vmatpush.bf16.msrb.mxu0 %v1096_v40  ;;  %v1092_v63 = vor.u32 %v1296_v60, %v1089_v61  ;;  %v1293_v1 = vld [vmem:[#allocation8 + $0x6c] sm:$0xf0]  ;;  %v1291_v2 = vld [vmem:[#allocation8 + $0x64] sm:$0xf]  ;;  %v1065_v5 = vld [vmem:[#allocation8 + $0x70] sm:$0xf0] }
  0x36   :  { %v1064_v4 = vor.u32 %v1293_v1, %v1063_v0  ;;  %v1071_v6 = vld [vmem:[#allocation8 + $0x68] sm:$0xf]  ;;  %v1068_v7 = vor.u32 %v1291_v2, %v1065_v5  ;;  %v1294_v8 = vld [vmem:[#allocation8 + $0x74] sm:$0xf0]  ;;  %v1292_v9 = vld [vmem:[#allocation8 + $0x6c] sm:$0xf] }
  0x37   :  { %543 = vmatpush.bf16.msrb.mxu1 %v1100_v44  ;;  %556 = vmatpush.bf16.msrb.mxu2 %v1104_v49  ;;  %v1073_v10 = vld [vmem:[#allocation8 + $0x78] sm:$0xf0]  ;;  %v176_v12 = vperm.slane %v1764_v48, 2  ;;  %v1072_v13 = vor.u32 %v1294_v8, %v1071_v6  ;;  %v1047_v17 = vld [vmem:[#allocation8 + $0x40] sm:$0xf]  ;;  %s1669_s0 = smov [#allocation17]  }
  0x38   :  { %569 = vmatpush.bf16.msrb.mxu3 %v1108_v50  ;;  %v1076_v14 = vor.u32 %v1292_v9, %v1073_v10  ;;  %v1289_v18 = vld [vmem:[#allocation8 + $0x4c] sm:$0xf0]  ;;  %v1287_v19 = vld [vmem:[#allocation8 + $0x44] sm:$0xf]  ;;  %v1049_v22 = vld [vmem:[#allocation8 + $0x50] sm:$0xf0] }
  0x39   :  { %531 = vmatpush.bf16.msrb.mxu0 %v1080_v54  ;;  %v1048_v21 = vor.u32 %v1289_v18, %v1047_v17  ;;  %v1055_v23 = vld [vmem:[#allocation8 + $0x48] sm:$0xf]  ;;  %v1290_v24 = vld [vmem:[#allocation8 + $0x54] sm:$0xf0]  ;;  %v1052_v26 = vor.u32 %v1287_v19, %v1049_v22  ;;  %v1288_v28 = vld [vmem:[#allocation8 + $0x4c] sm:$0xf] }
  0x3a   :  { %v1056_v27 = vor.u32 %v1290_v24, %v1055_v23  ;;  %v1057_v29 = vld [vmem:[#allocation8 + $0x58] sm:$0xf0]  ;;  %v1031_v32 = vld [vmem:[#allocation8 + $0x20] sm:$0xf]  ;;  %v1285_v33 = vld [vmem:[#allocation8 + $0x2c] sm:$0xf0] }
  0x3b   :  { %544 = vmatpush.bf16.msrb.mxu1 %v1084_v58  ;;  %557 = vmatpush.bf16.msrb.mxu2 %v1088_v59  ;;  %v1060_v31 = vor.u32 %v1288_v28, %v1057_v29  ;;  %v1032_v34 = vor.u32 %v1285_v33, %v1031_v32  ;;  %v1283_v35 = vld [vmem:[#allocation8 + $0x24] sm:$0xf]  ;;  %v1033_v36 = vld [vmem:[#allocation8 + $0x30] sm:$0xf0]  ;;  %v1039_v37 = vld [vmem:[#allocation8 + $0x28] sm:$0xf] }
  0x3c   :  { %570 = vmatpush.bf16.msrb.mxu3 %v1092_v63  ;;  %v1036_v38 = vor.u32 %v1283_v35, %v1033_v36  ;;  %v1286_v39 = vld [vmem:[#allocation8 + $0x34] sm:$0xf0]  ;;  %v1284_v40 = vld [vmem:[#allocation8 + $0x2c] sm:$0xf]  ;;  %v1041_v41 = vld [vmem:[#allocation8 + $0x38] sm:$0xf0] }
  0x3d   :  { %532 = vmatpush.bf16.msrb.mxu0 %v1064_v4  ;;  %v1040_v43 = vor.u32 %v1286_v39, %v1039_v37  ;;  %v1044_v44 = vor.u32 %v1284_v40, %v1041_v41  ;;  %v1015_v45 = vld [vmem:[#allocation8] sm:$0xf]  ;;  %v1281_v46 = vld [vmem:[#allocation8 + $0xc] sm:$0xf0]  ;;  %v1279_v47 = vld [vmem:[#allocation8 + $0x4] sm:$0xf] }
  0x3e   :  { %v1016_v52 = vor.u32 %v1281_v46, %v1015_v45  ;;  %v1017_v53 = vld [vmem:[#allocation8 + $0x10] sm:$0xf0]  ;;  %v1023_v54 = vld [vmem:[#allocation8 + $0x8] sm:$0xf]  ;;  %v1282_v55 = vld [vmem:[#allocation8 + $0x14] sm:$0xf0] }
  0x3f   :  { %545 = vmatpush.bf16.msrb.mxu1 %v1068_v7  ;;  %558 = vmatpush.bf16.msrb.mxu2 %v1072_v13  ;;  %v1020_v57 = vor.u32 %v1279_v47, %v1017_v53  ;;  %v1280_v58 = vld [vmem:[#allocation8 + $0xc] sm:$0xf]  ;;  %v1025_v59 = vld [vmem:[#allocation8 + $0x18] sm:$0xf0]  ;;  %v1024_v61 = vor.u32 %v1282_v55, %v1023_v54  ;;  %v1258_v46 = vld [vmem:[#allocation13 + $0xe0] sm:$0xf] }
  0x40   :  { %571 = vmatpush.bf16.msrb.mxu3 %v1076_v14  ;;  %v1341_v47 = vld [vmem:[#allocation13 + $0xec] sm:$0xf0]  ;;  %v1342_v53 = vld [vmem:[#allocation13 + $0xf4] sm:$0xf0]  ;;  %s974_s2 = sshll.u32 %s1669_s0, 4  ;;  %s976_s13 = sshll.u32 %s1789_s10, 4  ;;  %s975_s2 = int_to_ptr.vmem [resolvable:$true] %s974_s2  ;;  %s977_s13 = int_to_ptr.hbm [resolvable:$true] %s976_s13 }
  0x41   :  { %533 = vmatpush.bf16.msrb.mxu0 %v1048_v21 }
  0x43   :  { %546 = vmatpush.bf16.msrb.mxu1 %v1052_v26  ;;  %559 = vmatpush.bf16.msrb.mxu2 %v1056_v27  ;;  %v1355_v26 = vld [vmem:[#allocation7] ss:$0 sm:$0xff] }
  0x44   :  { %572 = vmatpush.bf16.msrb.mxu3 %v1060_v31 }
  0x45   :  { %534 = vmatpush.bf16.msrb.mxu0 %v1032_v34 }
  0x47   :  { %547 = vmatpush.bf16.msrb.mxu1 %v1036_v38  ;;  %560 = vmatpush.bf16.msrb.mxu2 %v1040_v43 }
  0x48   :  { %573 = vmatpush.bf16.msrb.mxu3 %v1044_v44 }
  0x49   :  { %535 = vmatpush.bf16.msrb.mxu0 %v1016_v52  ;;  %v1266_v52 = vld [vmem:[#allocation13 + $0xe8] sm:$0xf] }
  0x4a   :  { %v1267_v55 = vor.u32 %v1342_v53, %v1266_v52  ;;  %v1321_v52 = vld [vmem:[#allocation13 + $0x4c] sm:$0xf0]  ;;  %v1319_v53 = vld [vmem:[#allocation13 + $0x44] sm:$0xf] }
  0x4b   :  { %548 = vmatpush.bf16.msrb.mxu1 %v1020_v57  ;;  %561 = vmatpush.bf16.msrb.mxu2 %v1024_v61  ;;  %v1268_v57 = vld [vmem:[#allocation13 + $0xf8] sm:$0xf0]  ;;  %v1335_v61 = vld [vmem:[#allocation13 + $0xc4] sm:$0xf] }
  0x4f   :  { %876 = vmatpush.bf16.msra.mxu2 %v1267_v55  ;;  %v1180_v55 = vld [vmem:[#allocation13 + $0x50] sm:$0xf0] }
  0xa9   :  { %v215_v11 = vpop.f32.mrf.mxu0 }
  0xaa   :  { %v216_v15 = vadd.f32 %v215_v11, %v174_v62  ;;  %v228_v16 = vpop.f32.mrf.mxu1  ;;  %v1028_v62 = vor.u32 %v1280_v58, %v1025_v59  ;;  %v1242_v59 = vld [vmem:[#allocation13 + $0xc0] sm:$0xf] }
  0xab   :  { %v229_v20 = vadd.f32 %v228_v16, %v175_v3  ;;  %v177_v3 = vperm.slane %v1764_v48, 3 }
  0xac   :  { %v1010_v25 = vmul.f32 -1.442695, %v216_v15  ;;  %574 = vmatpush.bf16.msrb.mxu3 %v1028_v62 }
  0xad   :  { %v1011_v30 = vmul.f32 -1.442695, %v229_v20 }
  0xae   :  { %1358 = vpow2.f32 %v1010_v25 }
  0xaf   :  { %1360 = vpow2.f32 %v1011_v30 }
  0xb1   :  { %v241_v42 = vpop.f32.mrf.mxu2  ;;  %v217_v50 = vpop.f32.mrf.mxu0 }
  0xb2   :  { %v242_v49 = vadd.f32 %v241_v42, %v176_v12  ;;  %v254_v51 = vpop.f32.mrf.mxu3  ;;  %v230_v56 = vpop.f32.mrf.mxu1  ;;  %v1259_v50 = vor.u32 %v1341_v47, %v1258_v46 }
  0xb3   :  { %v255_v7 = vadd.f32 %v254_v51, %v177_v3  ;;  %v1260_v51 = vld [vmem:[#allocation13 + $0xf0] sm:$0xf0]  ;;  %v1340_v56 = vld [vmem:[#allocation13 + $0xec] sm:$0xf] }
  0xb4   :  { %v1012_v60 = vmul.f32 -1.442695, %v242_v49  ;;  %v1359_v63 = vpop.eup %1358  ;;  %v1339_v49 = vld [vmem:[#allocation13 + $0xe4] sm:$0xf]  ;;  %850 = vmatpush.bf16.msra.mxu0 %v1259_v50  ;;  %v1271_v58 = vor.u32 %v1340_v56, %v1268_v57  ;;  %v1186_v56 = vld [vmem:[#allocation13 + $0x48] sm:$0xf] }
  0xb5   :  { %v1361_v0 = vpop.eup %1360  ;;  %v267_v1 = vadd.f32 1.0, %v1359_v63  ;;  %v1263_v54 = vor.u32 %v1339_v49, %v1260_v51  ;;  %v1244_v63 = vld [vmem:[#allocation13 + $0xd0] sm:$0xf0]  ;;  %v1178_v51 = vld [vmem:[#allocation13 + $0x40] sm:$0xf] }
  0xb6   :  { %1362 = vpow2.f32 %v1012_v60  ;;  %v268_v2 = vadd.f32 1.0, %v1361_v0  ;;  %v1337_v60 = vld [vmem:[#allocation13 + $0xcc] sm:$0xf0]  ;;  %889 = vmatpush.bf16.msra.mxu3 %v1271_v58  ;;  %v1250_v0 = vld [vmem:[#allocation13 + $0xc8] sm:$0xf] }
  0xb7   :  { %1364 = vrcp.f32 %v267_v1  ;;  %v281_v15 = vand.u32 2147483648, %v267_v1  ;;  %v279_v48 = vand.u32 2147483647, %v267_v1  ;;  %vm275_vm3 = vweird.f32 %v267_v1  ;;  %863 = vmatpush.bf16.msra.mxu1 %v1263_v54  ;;  %v1322_v57 = vld [vmem:[#allocation13 + $0x54] sm:$0xf0] }
  0xb8   :  { %1366 = vrcp.f32 %v268_v2  ;;  %v296_v16 = vand.u32 2147483648, %v268_v2  ;;  %v294_v19 = vand.u32 2147483647, %v268_v2  ;;  %vm290_vm4 = vweird.f32 %v268_v2 }
  0xb9   :  { %v243_v4 = vpop.f32.mrf.mxu2  ;;  %v282_v24 = vor.u32 1.1754944e-38, %v281_v15  ;;  %vm280_vm7 = vcmp.eq.f32.partialorder %v279_v48, 8.507059e+37  ;;  %v1243_v62 = vor.u32 %v1337_v60, %v1242_v59  ;;  %v1770_v48 = vld [vmem:[#allocation10] sm:$0xf]  ;;  %v1179_v54 = vor.u32 %v1321_v52, %v1178_v51 }
  0xba   :  { %v256_v5 = vpop.f32.mrf.mxu3  ;;  %v297_v27 = vor.u32 1.1754944e-38, %v296_v16  ;;  %vm295_vm8 = vcmp.eq.f32.partialorder %v294_v19, 8.507059e+37  ;;  %v1336_v4 = vld [vmem:[#allocation13 + $0xcc] sm:$0xf]  ;;  %v1210_v19 = vld [vmem:[#allocation13 + $0x80] sm:$0xf]  ;;  %v1183_v60 = vor.u32 %v1319_v53, %v1180_v55 }
  0xbb   :  { %v1252_v5 = vld [vmem:[#allocation13 + $0xd8] sm:$0xf0]  ;;  %851 = vmatpush.bf16.msra.mxu0 %v1243_v62  ;;  %v1332_v16 = vld [vmem:[#allocation13 + $0xac] sm:$0xf] }
  0xbc   :  { %v1363_v6 = vpop.eup %1362  ;;  %v1320_v62 = vld [vmem:[#allocation13 + $0x4c] sm:$0xf] }
  0xbd   :  { %v269_v8 = vadd.f32 1.0, %v1363_v6  ;;  %v1365_v9 = vpop.eup %1364  ;;  %v1255_v6 = vor.u32 %v1336_v4, %v1252_v5  ;;  %v1315_v4 = vld [vmem:[#allocation13 + $0x24] sm:$0xf]  ;;  %v1164_v5 = vld [vmem:[#allocation13 + $0x30] sm:$0xf0] }
  0xbe   :  { %v1367_v10 = vpop.eup %1366  ;;  %v271_v11 = vmul.f32 %v1365_v9, %v267_v1  ;;  %vm276_vm1 = vweird.f32 %v1365_v9  ;;  %v1338_v1 = vld [vmem:[#allocation13 + $0xd4] sm:$0xf0] }
  0xbf   :  { %1368 = vrcp.f32 %v269_v8  ;;  %v286_v12 = vmul.f32 %v1367_v10, %v268_v2  ;;  %vm291_vm2 = vweird.f32 %v1367_v10  ;;  %vm277_vm5 = vmor %vm275_vm3, %vm276_vm1  ;;  %v311_v38 = vand.u32 2147483648, %v269_v8  ;;  %890 = vmatpush.bf16.msra.mxu3 %v1255_v6  ;;  %v1170_v6 = vld [vmem:[#allocation13 + $0x28] sm:$0xf] }
  0xc0   :  { %1370 = vtanh.f32 %v255_v7  ;;  %v272_v13 = vsub.f32 1.0, %v271_v11  ;;  %vm292_vm6 = vmor %vm290_vm4, %vm291_vm2  ;;  %vm305_vm10 = vweird.f32 %v269_v8  ;;  %v309_v39 = vand.u32 2147483647, %v269_v8  ;;  %v1226_v7 = vld [vmem:[#allocation13 + $0xa0] sm:$0xf] }
  0xc1   :  { %v287_v14 = vsub.f32 1.0, %v286_v12  ;;  %v312_v41 = vor.u32 1.1754944e-38, %v311_v38  ;;  %v1247_v2 = vor.u32 %v1335_v61, %v1244_v63  ;;  %v1251_v3 = vor.u32 %v1338_v1, %v1250_v0  ;;  %v1228_v11 = vld [vmem:[#allocation13 + $0xb0] sm:$0xf0]  ;;  %v1234_v12 = vld [vmem:[#allocation13 + $0xa8] sm:$0xf] }
  0xc2   :  { %v273_v17 = vmul.f32 %v1365_v9, %v272_v13  ;;  %vm310_vm12 = vcmp.eq.f32.partialorder %v309_v39, 8.507059e+37  ;;  %v1334_v13 = vld [vmem:[#allocation13 + $0xb4] sm:$0xf0]  ;;  %v1202_v38 = vld [vmem:[#allocation13 + $0x68] sm:$0xf]  ;;  %v1187_v61 = vor.u32 %v1322_v57, %v1186_v56 }
  0xc3   :  { %v288_v18 = vmul.f32 %v1367_v10, %v287_v14  ;;  %864 = vmatpush.bf16.msra.mxu1 %v1247_v2  ;;  %877 = vmatpush.bf16.msra.mxu2 %v1251_v3  ;;  %v1235_v15 = vor.u32 %v1334_v13, %v1234_v12  ;;  %v1188_v63 = vld [vmem:[#allocation13 + $0x58] sm:$0xf0]  ;;  %v1162_v0 = vld [vmem:[#allocation13 + $0x20] sm:$0xf]  ;;  %v1317_v1 = vld [vmem:[#allocation13 + $0x2c] sm:$0xf0] }
  0xc4   :  { %v274_v21 = vadd.f32 %v1365_v9, %v273_v17  ;;  %v1236_v17 = vld [vmem:[#allocation13 + $0xb8] sm:$0xf0]  ;;  %v1191_v2 = vor.u32 %v1320_v62, %v1188_v63  ;;  %v1163_v3 = vor.u32 %v1317_v1, %v1162_v0 }
  0xc5   :  { %v1369_v20 = vpop.eup %1368  ;;  %v289_v25 = vadd.f32 %v1367_v10, %v288_v18  ;;  %v1239_v18 = vor.u32 %v1332_v16, %v1236_v17  ;;  %v1313_v16 = vld [vmem:[#allocation13 + $0xc] sm:$0xf0]  ;;  %v1311_v17 = vld [vmem:[#allocation13 + $0x4] sm:$0xf] }
  0xc6   :  { %v1371_v22 = vpop.eup %1370  ;;  %v301_v23 = vmul.f32 %v1369_v20, %v269_v8  ;;  %v278_v28 = vsel %vm277_vm5, %v1365_v9, %v274_v21  ;;  %vm306_vm9 = vweird.f32 %v1369_v20  ;;  %v1333_v8 = vld [vmem:[#allocation13 + $0xac] sm:$0xf0]  ;;  %v1331_v9 = vld [vmem:[#allocation13 + $0xa4] sm:$0xf] }
  0xc7   :  { %v283_v30 = vsel %vm280_vm7, %v282_v24, %v278_v28  ;;  %v293_v31 = vsel %vm292_vm6, %v1367_v10, %v289_v25  ;;  %vm307_vm11 = vmor %vm305_vm10, %vm306_vm9  ;;  %v1227_v10 = vor.u32 %v1333_v8, %v1226_v7  ;;  %v1231_v14 = vor.u32 %v1331_v9, %v1228_v11  ;;  %878 = vmatpush.bf16.msra.mxu2 %v1235_v15  ;;  %v1327_v21 = vld [vmem:[#allocation13 + $0x84] sm:$0xf]  ;;  %v1218_v24 = vld [vmem:[#allocation13 + $0x88] sm:$0xf] }
  0xc8   :  { %v302_v29 = vsub.f32 1.0, %v301_v23  ;;  %v298_v32 = vsel %vm295_vm8, %v297_v27, %v293_v31  ;;  %v320_v33 = vmul.f32 %v1371_v22, %v283_v30  ;;  %891 = vmatpush.bf16.msra.mxu3 %v1239_v18  ;;  %v1212_v23 = vld [vmem:[#allocation13 + $0x90] sm:$0xf0]  ;;  %v1330_v25 = vld [vmem:[#allocation13 + $0x94] sm:$0xf0]  ;;  %v360_v30 = vperm.slane %v1770_v48, 0 }
  0xc9   :  { %v319_v34 = vmul.f32 %v1355_v26, %v298_v32  ;;  %852 = vmatpush.bf16.msra.mxu0 %v1227_v10  ;;  %865 = vmatpush.bf16.msra.mxu1 %v1231_v14  ;;  %v1215_v26 = vor.u32 %v1327_v21, %v1212_v23  ;;  %v1219_v27 = vor.u32 %v1330_v25, %v1218_v24  ;;  %v1328_v28 = vld [vmem:[#allocation13 + $0x8c] sm:$0xf]  ;;  %v361_v31 = vperm.slane %v1770_v48, 1  ;;  %v1318_v8 = vld [vmem:[#allocation13 + $0x34] sm:$0xf0] }
  0xca   :  { %v303_v35 = vmul.f32 %v1369_v20, %v302_v29  ;;  %v1220_v29 = vld [vmem:[#allocation13 + $0x98] sm:$0xf0]  ;;  %v1167_v7 = vor.u32 %v1315_v4, %v1164_v5  ;;  %v1316_v9 = vld [vmem:[#allocation13 + $0x2c] sm:$0xf]  ;;  %v1171_v13 = vor.u32 %v1318_v8, %v1170_v6  ;;  %v1146_v15 = vld [vmem:[#allocation13] sm:$0xf] }
  0xcb   :  { %v321_v36 = vadd.f32 %v320_v33, %v319_v34  ;;  %v1223_v32 = vor.u32 %v1328_v28, %v1220_v29  ;;  %879 = vmatpush.bf16.msra.mxu2 %v1219_v27  ;;  %v1194_v33 = vld [vmem:[#allocation13 + $0x60] sm:$0xf]  ;;  %v1325_v34 = vld [vmem:[#allocation13 + $0x6c] sm:$0xf0]  ;;  %v1172_v10 = vld [vmem:[#allocation13 + $0x38] sm:$0xf0]  ;;  %v1147_v21 = vor.u32 %v1313_v16, %v1146_v15 }
  0xcc   :  { %v304_v37 = vadd.f32 %v1369_v20, %v303_v35  ;;  %v1323_v35 = vld [vmem:[#allocation13 + $0x64] sm:$0xf]  ;;  %v1175_v14 = vor.u32 %v1316_v9, %v1172_v10  ;;  %v1154_v23 = vld [vmem:[#allocation13 + $0x8] sm:$0xf]  ;;  %v1314_v24 = vld [vmem:[#allocation13 + $0x14] sm:$0xf0] }
  0xcd   :  { %1372 = vtanh.f32 %v321_v36  ;;  %866 = vmatpush.bf16.msra.mxu1 %v1215_v26  ;;  %892 = vmatpush.bf16.msra.mxu3 %v1223_v32  ;;  %v1195_v36 = vor.u32 %v1325_v34, %v1194_v33  ;;  %v1312_v26 = vld [vmem:[#allocation13 + $0xc] sm:$0xf]  ;;  %v1156_v27 = vld [vmem:[#allocation13 + $0x18] sm:$0xf0]  ;;  %v1155_v29 = vor.u32 %v1314_v24, %v1154_v23  ;;  %v678_v15 = vld [vmem:[#allocation14] sm:$0xf] }
  0xce   :  { %v308_v40 = vsel %vm307_vm11, %v1369_v20, %v304_v37  ;;  %v1329_v20 = vld [vmem:[#allocation13 + $0x8c] sm:$0xf0]  ;;  %v1196_v37 = vld [vmem:[#allocation13 + $0x70] sm:$0xf0]  ;;  %v682_v16 = vperm.slane %v678_v15, 0  ;;  %v684_v24 = vperm.slane %v678_v15, 2 }
  0xcf   :  { %v313_v43 = vsel %vm310_vm12, %v312_v41, %v308_v40  ;;  %v1211_v22 = vor.u32 %v1329_v20, %v1210_v19  ;;  %v1199_v39 = vor.u32 %v1323_v35, %v1196_v37  ;;  %v1326_v40 = vld [vmem:[#allocation13 + $0x74] sm:$0xf0]  ;;  %v1324_v41 = vld [vmem:[#allocation13 + $0x6c] sm:$0xf]  ;;  %v363_v37 = vperm.slane %v1770_v48, 3 }
  0xd0   :  { %v1203_v46 = vor.u32 %v1326_v40, %v1202_v38 }
  0xd1   :  { %853 = vmatpush.bf16.msra.mxu0 %v1211_v22  ;;  %867 = vmatpush.bf16.msra.mxu1 %v1199_v39  ;;  %v1148_v22 = vld [vmem:[#allocation13 + $0x10] sm:$0xf0] }
  0xd2   :  { %880 = vmatpush.bf16.msra.mxu2 %v1203_v46  ;;  %v1151_v25 = vor.u32 %v1311_v17, %v1148_v22  ;;  %v683_v17 = vperm.slane %v678_v15, 1 }
  0xd3   :  { %v1373_v42 = vpop.eup %1372 }
  0xd4   :  { %v323_v44 = vmul.f32 %v1373_v42, %v313_v43  ;;  %v1204_v42 = vld [vmem:[#allocation13 + $0x78] sm:$0xf0] }
  0xd5   :  { %854 = vmatpush.bf16.msra.mxu0 %v1195_v36  ;;  %v1207_v47 = vor.u32 %v1324_v41, %v1204_v42  ;;  %868 = vmatpush.bf16.msra.mxu1 %v1183_v60 }
  0xd6   :  { %v358_v45 = vpack.c.bf16 %v323_v44, %v323_v44  ;;  %881 = vmatpush.bf16.msra.mxu2 %v1187_v61 }
  0xd7   :  { %893 = vmatpush.bf16.msra.mxu3 %v1207_v47 }
  0xd8   :  { %536 = vmatmul.bf16.vlgmr.msrb.gmra.mxu0 %v358_v45  ;;  %549 = vmatmul.bf16.vlgmr.msrb.gmra.mxu1 %v358_v45 }
  0xd9   :  { %562 = vmatmul.bf16.vlgmr.msrb.gmra.mxu2 %v358_v45  ;;  %575 = vmatmul.bf16.vlgmr.msrb.gmra.mxu3 %v358_v45  ;;  %v362_v45 = vperm.slane %v1770_v48, 2 }
  0xda   :  { %855 = vmatpush.bf16.msra.mxu0 %v1179_v54  ;;  %869 = vmatpush.bf16.msra.mxu1 %v1167_v7 }
  0xdb   :  { %894 = vmatpush.bf16.msra.mxu3 %v1191_v2  ;;  %882 = vmatpush.bf16.msra.mxu2 %v1171_v13 }
  0xde   :  { %856 = vmatpush.bf16.msra.mxu0 %v1163_v3  ;;  %870 = vmatpush.bf16.msra.mxu1 %v1151_v25 }
  0xdf   :  { %895 = vmatpush.bf16.msra.mxu3 %v1175_v14  ;;  %883 = vmatpush.bf16.msra.mxu2 %v1155_v29 }
  0xe2   :  { %857 = vmatpush.bf16.msra.mxu0 %v1147_v21 }
 0x155   :  { %v537_v43 = vpop.f32.mrf.mxu0  ;;  %v550_v44 = vpop.f32.mrf.mxu1 }
 0x156   :  { %v538_v49 = vadd.f32 %v537_v43, %v360_v30  ;;  %v551_v50 = vadd.f32 %v550_v44, %v361_v31  ;;  %v1159_v31 = vor.u32 %v1312_v26, %v1156_v27 }
 0x158   :  { %v1141_v58 = vmul.f32 -1.442695, %v538_v49  ;;  %v1142_v59 = vmul.f32 -1.442695, %v551_v50  ;;  %896 = vmatpush.bf16.msra.mxu3 %v1159_v31 }
 0x15a   :  { %1374 = vpow2.f32 %v1141_v58  ;;  %v1356_v58 = vld [vmem:[#allocation11] ss:$0 sm:$0xff] }
 0x15b   :  { %1376 = vpow2.f32 %v1142_v59 }
 0x15c   :  { %v563_v11 = vpop.f32.mrf.mxu2  ;;  %v576_v12 = vpop.f32.mrf.mxu3 }
 0x15d   :  { %v564_v18 = vadd.f32 %v563_v11, %v362_v45  ;;  %v539_v19 = vpop.f32.mrf.mxu0  ;;  %v552_v20 = vpop.f32.mrf.mxu1  ;;  %v577_v41 = vadd.f32 %v576_v12, %v363_v37  ;;  %v685_v37 = vperm.slane %v678_v15, 3 }
 0x15f   :  { %v1143_v28 = vmul.f32 -1.442695, %v564_v18 }
 0x160   :  { %v1375_v30 = vpop.eup %1374 }
 0x161   :  { %v1377_v32 = vpop.eup %1376  ;;  %v589_v33 = vadd.f32 1.0, %v1375_v30  ;;  %1378 = vpow2.f32 %v1143_v28 }
 0x162   :  { %v590_v34 = vadd.f32 1.0, %v1377_v32 }
 0x163   :  { %1380 = vrcp.f32 %v589_v33  ;;  %v603_v47 = vand.u32 2147483648, %v589_v33  ;;  %v601_v51 = vand.u32 2147483647, %v589_v33  ;;  %vm597_vm15 = vweird.f32 %v589_v33 }
 0x164   :  { %1382 = vrcp.f32 %v590_v34  ;;  %v565_v35 = vpop.f32.mrf.mxu2  ;;  %v578_v36 = vpop.f32.mrf.mxu3  ;;  %v618_v49 = vand.u32 2147483648, %v590_v34  ;;  %v616_v53 = vand.u32 2147483647, %v590_v34  ;;  %vm612_vm0 = vweird.f32 %v590_v34 }
 0x165   :  { %v604_v56 = vor.u32 1.1754944e-38, %v603_v47  ;;  %vm602_vm3 = vcmp.eq.f32.partialorder %v601_v51, 8.507059e+37 }
 0x166   :  { %v619_v59 = vor.u32 1.1754944e-38, %v618_v49  ;;  %vm617_vm4 = vcmp.eq.f32.partialorder %v616_v53, 8.507059e+37 }
 0x167   :  { %v1379_v38 = vpop.eup %1378 }
 0x168   :  { %v591_v39 = vadd.f32 1.0, %v1379_v38 }
 0x169   :  { %v1381_v40 = vpop.eup %1380 }
 0x16a   :  { %v1383_v42 = vpop.eup %1382  ;;  %v593_v43 = vmul.f32 %v1381_v40, %v589_v33  ;;  %1384 = vrcp.f32 %v591_v39  ;;  %vm598_vm13 = vweird.f32 %v1381_v40  ;;  %v633_v7 = vand.u32 2147483648, %v591_v39 }
 0x16b   :  { %v608_v44 = vmul.f32 %v1383_v42, %v590_v34  ;;  %1386 = vtanh.f32 %v577_v41  ;;  %vm613_vm14 = vweird.f32 %v1383_v42  ;;  %vm599_vm1 = vmor %vm597_vm15, %vm598_vm13  ;;  %vm627_vm6 = vweird.f32 %v591_v39 }
 0x16c   :  { %v594_v45 = vsub.f32 1.0, %v593_v43  ;;  %vm614_vm2 = vmor %vm612_vm0, %vm613_vm14  ;;  %v631_v8 = vand.u32 2147483647, %v591_v39  ;;  %v634_v10 = vor.u32 1.1754944e-38, %v633_v7 }
 0x16d   :  { %v609_v46 = vsub.f32 1.0, %v608_v44 }
 0x16e   :  { %v595_v50 = vmul.f32 %v1381_v40, %v594_v45  ;;  %vm632_vm8 = vcmp.eq.f32.partialorder %v631_v8, 8.507059e+37 }
 0x16f   :  { %v610_v52 = vmul.f32 %v1383_v42, %v609_v46 }
 0x170   :  { %v1385_v48 = vpop.eup %1384  ;;  %v596_v54 = vadd.f32 %v1381_v40, %v595_v50 }
 0x171   :  { %v623_v55 = vmul.f32 %v1385_v48, %v591_v39  ;;  %v611_v57 = vadd.f32 %v1383_v42, %v610_v52  ;;  %v1387_v61 = vpop.eup %1386  ;;  %vm628_vm5 = vweird.f32 %v1385_v48 }
 0x172   :  { %v600_v60 = vsel %vm599_vm1, %v1381_v40, %v596_v54  ;;  %vm629_vm7 = vmor %vm627_vm6, %vm628_vm5 }
 0x173   :  { %v624_v62 = vsub.f32 1.0, %v623_v55  ;;  %v605_v63 = vsel %vm602_vm3, %v604_v56, %v600_v60  ;;  %v615_v0 = vsel %vm614_vm2, %v1383_v42, %v611_v57 }
 0x174   :  { %v620_v1 = vsel %vm617_vm4, %v619_v59, %v615_v0  ;;  %v642_v2 = vmul.f32 %v1387_v61, %v605_v63 }
 0x175   :  { %v641_v3 = vmul.f32 %v1356_v58, %v620_v1  ;;  %v625_v4 = vmul.f32 %v1385_v48, %v624_v62  ;;  %v1357_v58 = vld [vmem:[#allocation16] ss:$0 sm:$0xff] }
 0x177   :  { %v643_v5 = vadd.f32 %v642_v2, %v641_v3  ;;  %v626_v6 = vadd.f32 %v1385_v48, %v625_v4 }
 0x179   :  { %1388 = vtanh.f32 %v643_v5  ;;  %v630_v9 = vsel %vm629_vm7, %v1385_v48, %v626_v6 }
 0x17a   :  { %v635_v12 = vsel %vm632_vm8, %v634_v10, %v630_v9 }
 0x17f   :  { %v1389_v11 = vpop.eup %1388 }
 0x180   :  { %v645_v13 = vmul.f32 %v1389_v11, %v635_v12 }
 0x182   :  { %v680_v14 = vpack.c.bf16 %v645_v13, %v645_v13 }
 0x184   :  { %858 = vmatmul.bf16.vlgmr.msra.gmra.mxu0 %v680_v14  ;;  %871 = vmatmul.bf16.vlgmr.msra.gmra.mxu1 %v680_v14 }
 0x185   :  { %884 = vmatmul.bf16.vlgmr.msra.gmra.mxu2 %v680_v14  ;;  %897 = vmatmul.bf16.vlgmr.msra.gmra.mxu3 %v680_v14 }
 0x201   :  { %v859_v18 = vpop.f32.mrf.mxu0  ;;  %v872_v19 = vpop.f32.mrf.mxu1 }
 0x202   :  { %v860_v20 = vadd.f32 %v859_v18, %v682_v16  ;;  %v873_v21 = vadd.f32 %v872_v19, %v683_v17 }
 0x204   :  { %v1272_v22 = vmul.f32 -1.442695, %v860_v20  ;;  %v1273_v23 = vmul.f32 -1.442695, %v873_v21 }
 0x206   :  { %1390 = vpow2.f32 %v1272_v22 }
 0x207   :  { %1392 = vpow2.f32 %v1273_v23 }
 0x208   :  { %v885_v25 = vpop.f32.mrf.mxu2  ;;  %v898_v26 = vpop.f32.mrf.mxu3 }
 0x209   :  { %v886_v27 = vadd.f32 %v885_v25, %v684_v24  ;;  %v861_v28 = vpop.f32.mrf.mxu0  ;;  %v874_v29 = vpop.f32.mrf.mxu1  ;;  %v899_v41 = vadd.f32 %v898_v26, %v685_v37 }
 0x20b   :  { %v1274_v30 = vmul.f32 -1.442695, %v886_v27 }
 0x20c   :  { %v1391_v31 = vpop.eup %1390 }
 0x20d   :  { %v1393_v32 = vpop.eup %1392  ;;  %v911_v33 = vadd.f32 1.0, %v1391_v31  ;;  %1394 = vpow2.f32 %v1274_v30 }
 0x20e   :  { %v912_v34 = vadd.f32 1.0, %v1393_v32 }
 0x20f   :  { %1396 = vrcp.f32 %v911_v33  ;;  %v925_v47 = vand.u32 2147483648, %v911_v33  ;;  %v923_v51 = vand.u32 2147483647, %v911_v33  ;;  %vm919_vm11 = vweird.f32 %v911_v33 }
 0x210   :  { %1398 = vrcp.f32 %v912_v34  ;;  %v887_v35 = vpop.f32.mrf.mxu2  ;;  %v900_v36 = vpop.f32.mrf.mxu3  ;;  %v940_v49 = vand.u32 2147483648, %v912_v34  ;;  %v938_v53 = vand.u32 2147483647, %v912_v34  ;;  %vm934_vm12 = vweird.f32 %v912_v34 }
 0x211   :  { %v926_v56 = vor.u32 1.1754944e-38, %v925_v47  ;;  %vm924_vm15 = vcmp.eq.f32.partialorder %v923_v51, 8.507059e+37 }
 0x212   :  { %v941_v59 = vor.u32 1.1754944e-38, %v940_v49  ;;  %vm939_vm0 = vcmp.eq.f32.partialorder %v938_v53, 8.507059e+37 }
 0x213   :  { %v1395_v38 = vpop.eup %1394 }
 0x214   :  { %v913_v39 = vadd.f32 1.0, %v1395_v38 }
 0x215   :  { %v1397_v40 = vpop.eup %1396 }
 0x216   :  { %v1399_v42 = vpop.eup %1398  ;;  %v915_v43 = vmul.f32 %v1397_v40, %v911_v33  ;;  %1400 = vrcp.f32 %v913_v39  ;;  %vm920_vm9 = vweird.f32 %v1397_v40  ;;  %v955_v7 = vand.u32 2147483648, %v913_v39 }
 0x217   :  { %v930_v44 = vmul.f32 %v1399_v42, %v912_v34  ;;  %1402 = vtanh.f32 %v899_v41  ;;  %vm935_vm10 = vweird.f32 %v1399_v42  ;;  %vm921_vm13 = vmor %vm919_vm11, %vm920_vm9  ;;  %vm949_vm2 = vweird.f32 %v913_v39 }
 0x218   :  { %v916_v45 = vsub.f32 1.0, %v915_v43  ;;  %vm936_vm14 = vmor %vm934_vm12, %vm935_vm10  ;;  %v953_v8 = vand.u32 2147483647, %v913_v39  ;;  %v956_v10 = vor.u32 1.1754944e-38, %v955_v7 }
 0x219   :  { %v931_v46 = vsub.f32 1.0, %v930_v44 }
 0x21a   :  { %v917_v50 = vmul.f32 %v1397_v40, %v916_v45  ;;  %vm954_vm4 = vcmp.eq.f32.partialorder %v953_v8, 8.507059e+37 }
 0x21b   :  { %v932_v52 = vmul.f32 %v1399_v42, %v931_v46 }
 0x21c   :  { %v1401_v48 = vpop.eup %1400  ;;  %v918_v54 = vadd.f32 %v1397_v40, %v917_v50 }
 0x21d   :  { %v945_v55 = vmul.f32 %v1401_v48, %v913_v39  ;;  %v933_v57 = vadd.f32 %v1399_v42, %v932_v52  ;;  %v1403_v61 = vpop.eup %1402  ;;  %vm950_vm1 = vweird.f32 %v1401_v48 }
 0x21e   :  { %v922_v60 = vsel %vm921_vm13, %v1397_v40, %v918_v54  ;;  %vm951_vm3 = vmor %vm949_vm2, %vm950_vm1 }
 0x21f   :  { %v946_v62 = vsub.f32 1.0, %v945_v55  ;;  %v927_v63 = vsel %vm924_vm15, %v926_v56, %v922_v60  ;;  %v937_v0 = vsel %vm936_vm14, %v1399_v42, %v933_v57 }
 0x220   :  { %v942_v1 = vsel %vm939_vm0, %v941_v59, %v937_v0  ;;  %v964_v2 = vmul.f32 %v1403_v61, %v927_v63 }
 0x221   :  { %v963_v3 = vmul.f32 %v1357_v58, %v942_v1  ;;  %v947_v4 = vmul.f32 %v1401_v48, %v946_v62 }
 0x223   :  { %v965_v5 = vadd.f32 %v964_v2, %v963_v3  ;;  %v948_v6 = vadd.f32 %v1401_v48, %v947_v4 }
 0x225   :  { %1404 = vtanh.f32 %v965_v5  ;;  %v952_v9 = vsel %vm951_vm3, %v1401_v48, %v948_v6 }
 0x226   :  { %v957_v12 = vsel %vm954_vm4, %v956_v10, %v952_v9 }
 0x22b   :  { %v1405_v11 = vpop.eup %1404 }
 0x22c   :  { %v967_v13 = vmul.f32 %v1405_v11, %v957_v12 }
 0x22e   :  { %968 = vst [vmem:[#allocation17] sm:$0xff] %v967_v13 }
 0x22f   :  { %979 = dma.vmem_to_hbm [thread:$0]  %s975_s2, 128, %s977_s13, [#allocation4]  }
 0x230   :  { %1656 = dma.done.wait [#allocation4], 128  }
 0x231   :  { %1657 = vsyncadd [#allocation4], 4294967168 }
 0x232   :  { %984 = vsyncpa [#allocation3], 1 }
 0x233   :  { %985 = vsyncpa [#allocation6], 1 }
 0x234   :  { %986 = vsyncpa [#allocation9], 1 }
 0x235   :  { %987 = vsyncpa [#allocation12], 1 }
 0x236   :  { %988 = vsyncpa [#allocation15], 1 }
 0x237   :  { %989 = vsyncpa [#allocation4], 1 }

</bundles_post_ra>
